<compile_context>
chip_gen: v5e
topology: v5e:2x2
jax: 0.10.0
libtpu: 0.0.40
codegen_flags: <defaults>
</compile_context>

<pallas_src>
import jax
import jax.numpy as jnp
from jax.experimental import pallas as pl
from jax.experimental.pallas import tpu as pltpu


def _round_up(x, m):
    return ((x + m - 1) // m) * m


def _qnet_kernel(x_ref, w_ref, b_ref, o_ref):
    # y = relu(x @ W + b); one large MXU matmul per row tile, f32 accumulate.
    y = jnp.dot(x_ref[...], w_ref[...], preferred_element_type=jnp.float32)
    o_ref[...] = jnp.maximum(y + b_ref[...], 0.0).astype(o_ref.dtype)


def mtrl_q_net_forward(x, w, b, *, block_rows=512, pallas_min_rows=1024,
                       force_pallas=False):
    """MTRL_Q_Net forward: relu(x @ w + b).

    x: (..., Din) with Din = hidden_dim * 2
    w: (Din, Dout)   (pre-transposed vs torch's (Dout, Din) layout)
    b: (1, Dout)
    Returns relu(x @ w + b) with shape (..., Dout), f32.
    """
    din = x.shape[-1]
    dout = w.shape[1]
    lead_shape = x.shape[:-1]

    # Flatten all leading dims into one row axis -> one big GEMM.
    x2 = x.reshape(-1, din)
    rows = x2.shape[0]

    # Small-problem bypass: launch overhead dominates; let XLA fuse it.
    if rows < pallas_min_rows and not force_pallas:
        out = jax.nn.relu(jnp.dot(x2, w, preferred_element_type=jnp.float32) + b)
        return out.astype(jnp.float32).reshape(*lead_shape, dout)

    # Row tile: multiple of 8, capped at block_rows, and capped near rows/2 so
    # the parallel grid axis has at least 2 steps when possible (v7x 2-TC).
    bt = min(block_rows, _round_up(rows, 8))
    if rows > 8:
        bt = min(bt, _round_up(-(-rows // 2), 8))
    bt = max(bt, 8)
    num_blocks = pl.cdiv(rows, bt)

    # VMEM budget (f32, 2x-buffered streams) -> explicit scoped limit.
    itemsize = 4
    vmem_est = 2 * itemsize * (bt * din + din * dout + dout + bt * dout)
    vmem_limit = int(min(max(2 * vmem_est, 32 * 1024 * 1024), 64 * 1024 * 1024))

    cost = pl.CostEstimate(
        flops=2 * rows * din * dout,
        transcendentals=0,
        bytes_accessed=itemsize * (rows * din + din * dout + dout + rows * dout),
    )

    out = pl.pallas_call(
        _qnet_kernel,
        out_shape=jax.ShapeDtypeStruct((rows, dout), jnp.float32),
        grid=(num_blocks,),
        in_specs=[
            pl.BlockSpec((bt, din), lambda i: (i, 0)),    # x rows, tiled (ragged last block OK)
            pl.BlockSpec((din, dout), lambda i: (0, 0)),  # weight, VMEM-resident
            pl.BlockSpec((1, dout), lambda i: (0, 0)),    # bias, VMEM-resident
        ],
        out_specs=pl.BlockSpec((bt, dout), lambda i: (i, 0)),
        compiler_params=pltpu.CompilerParams(
            dimension_semantics=("parallel",),
            vmem_limit_bytes=vmem_limit,
        ),
        cost_estimate=cost,
    )(x2, w, b)

    return out.reshape(*lead_shape, dout)


def init_params(key, hidden_dim, dout):
    """Deterministic init. Weight stored as (in, out) = (2*hidden_dim, dout)."""
    din = 2 * hidden_dim
    kw, kb = jax.random.split(key, 2)
    bound = 1.0 / jnp.sqrt(din)
    w = jax.random.uniform(kw, (din, dout), jnp.float32, -bound, bound)
    b = jax.random.uniform(kb, (1, dout), jnp.float32, -bound, bound)
    return w, b


def reference_forward(x, w, b):
    """Pure-JAX reference matching the PyTorch forward semantics."""
    return jax.nn.relu(x @ w + b)


if __name__ == "__main__":
    BATCH = 2
    N_TASKS = 8          # extra leading dim (Q-net applied per task/node)
    HIDDEN_DIM = 32      # -> Din = 64
    DOUT = 16

    key = jax.random.PRNGKey(0)
    kx, kp, kx2 = jax.random.split(key, 3)
    w, b = init_params(kp, HIDDEN_DIM, DOUT)

    # Case 1: small, module-consistent shape (kernel forced so the Pallas
    # path is exercised even below the small-problem bypass threshold).
    x = jax.random.normal(kx, (BATCH, N_TASKS, 2 * HIDDEN_DIM), jnp.float32)
    out = mtrl_q_net_forward(x, w, b, force_pallas=True)
    out = jax.block_until_ready(out)
    ref = reference_forward(x, w, b)
    assert out.shape == (BATCH, N_TASKS, DOUT), out.shape
    assert jnp.allclose(out, ref, atol=1e-5, rtol=1e-5), \
        f"max abs err = {jnp.max(jnp.abs(out - ref))}"

    # Case 2: row count not a multiple of 8 -> exercises the ragged boundary
    # block (masked store) and a >=2-step parallel grid.
    x2 = jax.random.normal(kx2, (3, 70, 2 * HIDDEN_DIM), jnp.float32)  # 210 rows
    out2 = mtrl_q_net_forward(x2, w, b, force_pallas=True)
    out2 = jax.block_until_ready(out2)
    ref2 = reference_forward(x2, w, b)
    assert out2.shape == (3, 70, DOUT), out2.shape
    assert jnp.allclose(out2, ref2, atol=1e-5, rtol=1e-5), \
        f"max abs err = {jnp.max(jnp.abs(out2 - ref2))}"

    print("KERNEL_OK")
</pallas_src>

<mosaic_0001>
module attributes {stable_mosaic.version = 11 : i64} {
  func.func @_qnet_kernel(%arg0: i32, %arg1: memref<8x64xf32, #tpu.memory_space<vmem>>, %arg2: memref<64x16xf32, #tpu.memory_space<vmem>>, %arg3: memref<1x16xf32, #tpu.memory_space<vmem>>, %arg4: memref<8x16xf32, #tpu.memory_space<vmem>>) attributes {dimension_semantics = [#tpu.dimension_semantics<parallel>], iteration_bounds = array<i64: 2>, scalar_prefetch = 0 : i64, scratch_operands = 0 : i64, tpu.core_type = #tpu.core_type<tc>, window_params = [{transform_indices = @transform_0, window_bounds = array<i64: 8, 64>}, {pipeline_mode = #tpu.pipeline_mode<synchronous>, transform_indices = @transform_1, window_bounds = array<i64: 64, 16>}, {pipeline_mode = #tpu.pipeline_mode<synchronous>, transform_indices = @transform_2, window_bounds = array<i64: 1, 16>}, {transform_indices = @transform_3, window_bounds = array<i64: 8, 16>}]} {
    %c0 = arith.constant 0 : index
    %c0_0 = arith.constant 0 : index
    %0 = vector.load %arg1[%c0, %c0_0] : memref<8x64xf32, #tpu.memory_space<vmem>>, vector<8x64xf32>
    %c0_1 = arith.constant 0 : index
    %c0_2 = arith.constant 0 : index
    %1 = vector.load %arg2[%c0_1, %c0_2] : memref<64x16xf32, #tpu.memory_space<vmem>>, vector<64x16xf32>
    %cst = arith.constant dense<0.000000e+00> : vector<8x16xf32>
    %2 = tpu.matmul %0, %1, %cst {dimension_numbers = #tpu.dot_dimension_numbers<[1], [0], [0], [1], [0, 0, 1, 1], [], []>} : vector<8x64xf32>, vector<64x16xf32>, vector<8x16xf32> -> vector<8x16xf32>
    %c0_3 = arith.constant 0 : index
    %c0_4 = arith.constant 0 : index
    %3 = vector.load %arg3[%c0_3, %c0_4] : memref<1x16xf32, #tpu.memory_space<vmem>>, vector<1x16xf32>
    %4 = vector.broadcast %3 : vector<1x16xf32> to vector<8x16xf32>
    %5 = arith.addf %2, %4 : vector<8x16xf32>
    %cst_5 = arith.constant 0.000000e+00 : f32
    %6 = vector.broadcast %cst_5 : f32 to vector<8x16xf32>
    %7 = arith.maximumf %5, %6 : vector<8x16xf32>
    %c0_6 = arith.constant 0 : index
    %c0_7 = arith.constant 0 : index
    %8 = vector.load %arg4[%c0_6, %c0_7] : memref<8x16xf32, #tpu.memory_space<vmem>>, vector<8x16xf32>
    tpu.vector_store %arg4[%c0_6, %c0_7], %7 {strides = array<i32>} : memref<8x16xf32, #tpu.memory_space<vmem>>, vector<8x16xf32>,
    return
  }
  func.func @transform_0(%arg0: i32) -> (i32, i32) {
    %c0_i32 = arith.constant 0 : i32
    %c0_i32_0 = arith.constant 0 : i32
    return %arg0, %c0_i32 : i32, i32
  }
  func.func @transform_1(%arg0: i32) -> (i32, i32) {
    %c0_i32 = arith.constant 0 : i32
    %c0_i32_0 = arith.constant 0 : i32
    %c0_i32_1 = arith.constant 0 : i32
    return %c0_i32, %c0_i32_0 : i32, i32
  }
  func.func @transform_2(%arg0: i32) -> (i32, i32) {
    %c0_i32 = arith.constant 0 : i32
    %c0_i32_0 = arith.constant 0 : i32
    %c0_i32_1 = arith.constant 0 : i32
    return %c0_i32, %c0_i32_0 : i32, i32
  }
  func.func @transform_3(%arg0: i32) -> (i32, i32) {
    %c0_i32 = arith.constant 0 : i32
    %c0_i32_0 = arith.constant 0 : i32
    return %arg0, %c0_i32 : i32, i32
  }
}

</mosaic_0001>

<bundles_post_ra>
// kernel: tpu_custom_call.1
= control target key start
LH: loop header
LB: loop body
LE: loop exit
PB: predicated region body
PF: predicated region fallthrough
CT: control target
= control target key end

     0   :  { %8 = vsyncpa [#allocation3], 0  ;;  %s528_s0 = inlined_call_operand.vmem [shape: f32[16,64], index: 0, kind: input, shape index: {}]   ;;  %s529_s1 = inlined_call_operand.vmem [shape: f32[64,16], index: 1, kind: input, shape index: {}]   ;;  %s530_s2 = inlined_call_operand.vmem [shape: f32[1,16], index: 2, kind: input, shape index: {}]   ;;  %s531_s3 = inlined_call_operand.hbm [shape: f32[16,16], index: 3, kind: output, shape index: {}]  }
   0x1   :  { %10 = vsyncpa [#allocation3 + $0x1], 0  ;;  %s416_s12 = smov 0   ;;  %s418_s13 = smov 0  }
   0x2   :  { %s420_s14 = smov 0   ;;  %s422_s15 = smov 0  }
   0x3 LB: > { %s437_s16 = sadd.s32 4294967295, %s394_s15   ;;  %s281_s17 = sadd.s32 4294967294, %s394_s15   ;;  %s394_s15 = sphi %s422_s15, %s537_s15   ;;  %s390_s14 = sphi %s420_s14, %s536_s14   ;;  %s386_s13 = sphi %s418_s13, %s535_s13   ;;  %s382_s12 = sphi %s416_s12, %s534_s12  }
   0x4   : > { %s441_s18 = sadd.s32 1, %s394_s15   ;;  %s91_s19 = sadd.s32 1, %s390_s14 }
   0x5   : > { %s88_s20 = ssub.s32 %s394_s15, %s441_s18  ;;  %p101_p0 = scmp.ne.s32.totalorder %s390_s14, %s386_s13 }
   0x6   : > { %p89_p1 = scmp.eq.s32.totalorder %s88_s20, 0  ;;  %p102_p2 = scmp.eq.s32.totalorder %s437_s16, 1 }
   0x7   : > { %p107_p3 = scmp.ne.s32.totalorder %s386_s13, %s382_s12  ;;  %p108_p4 = scmp.eq.s32.totalorder %s281_s17, 1 }
   0x8   : > { %s452_s21 = scalar_select %p89_p1, %s390_s14, %s91_s19  }
   0x9   : > { %p454_p5 = por %p102_p2, %p101_p0  ;;  %p458_p6 = por %p108_p4, %p107_p3 }
   0xa   : > { %p284_p7 = scmp.ge.s32.totalorder %s394_s15, 1  ;;  %p139_p8 = scmp.lt.s32.totalorder %s394_s15, 3 }
   0xc   : > { %p140_p9 = pnand %p284_p7, %p139_p8 }
   0xd   : > { %p162_p10 = scmp.lt.s32.totalorder (!%p140_p9), %s437_s16, 1  ;;  %s159_s27 = sand.u32 (!%p140_p9), 1, %s386_s13  }
   0xe   : > { %143 = sbr.rel (%p140_p9) target bundleno = 168 (0xa8), region = 32  ;;  %s285_s28 = sshll.u32 (!%p140_p9), %s159_s27, 3 }
   0xf   : > { %s289_s29 = sshll.u32 (!%p140_p9), %s437_s16, 3 }
  0x10   : > { %s217_s7 = scalar_lea.hbm (!%p140_p9), %s531_s3, %s289_s29 }
  0x11   : > { %s221_s10 = sshll.u32 (!%p140_p9), %s217_s7, 4  ;;  %s222_s10 = int_to_ptr.hbm [resolvable:$true] %s221_s10 }
  0x12   : > { %s346_s11 = sshra.s32 (!%p140_p9), %s222_s10, 4  ;;  %s347_s11 = int_to_ptr.hbm [resolvable:$true] %s346_s11 }
  0x13   : > { %v174_v0 = vld [vmem:[%s529_s1 + $0x38] sm:$0xff]  ;;  %v173_v1 = vld [vmem:[%s529_s1 + $0x30] sm:$0xff]  ;;  %v172_v2 = vld [vmem:[%s529_s1 + $0x28] sm:$0xff]  ;;  %s163_s30 = scalar_select %p162_p10, %s437_s16, 1  ;;  %vm179_vm0 = vcmask 523264   ;;  %vm204_vm1 = vcmask 130048  }
  0x14   : > { %191 = vmatpush.msra.mxu0 %v174_v0  ;;  %v171_v3 = vld [vmem:[%s529_s1 + $0x20] sm:$0xff]  ;;  %v170_v4 = vld [vmem:[%s529_s1 + $0x18] sm:$0xff]  ;;  %v169_v5 = vld [vmem:[%s529_s1 + $0x10] sm:$0xff]  ;;  %s207_s16 = scalar_lea.sflag [#allocation3], %s159_s27  ;;  %s348_s17 = scalar_lea.hbm %s347_s11, 8 }
  0x15   : > { %s286_s8 = sshll.u32 %s163_s30, 3  ;;  %v168_v6 = vld [vmem:[%s529_s1 + $0x8] sm:$0xff]  ;;  %v167_v7 = vld [vmem:[%s529_s1] sm:$0xff]  ;;  %p349_p11 = scmp.ne.s32.totalorder %s347_s11, %s348_s17 }
  0x16   : > { %192 = vmatpush.msra.mxu0 %v173_v1  ;;  %s165_s24 = scalar_lea.vmem %s528_s0, %s286_s8  ;;  %v331_v9 = vld [vmem:[%s530_s2] ss:$0 sm:$0xff]  ;;  %s161_s8 = scalar_lea.vmem [#allocation2], %s285_s28 }
  0x17   : > { %v166_v8 = vld [vmem:[%s165_s24] sm:$0xff]  ;;  %s219_s9 = sshll.u32 %s161_s8, 4  ;;  %p350_p12 = pnand %p349_p11, %p454_p5  ;;  %s220_s9 = int_to_ptr.vmem [resolvable:$true] %s219_s9 }
  0x18   : > { %193 = vmatpush.msra.mxu0 %v172_v2  ;;  %s352_s24 = scalar_lea.hbm %s531_s3, 16  ;;  %p353_p0 = scmp.lt.s32.totalorder %s347_s11, %s531_s3 }
  0x19   : > { %p351_p13 = pneg %p350_p12  ;;  %p354_p1 = scmp.lt.s32.totalorder %s352_s24, %s348_s17 }
  0x1a   : > { %194 = vmatpush.msra.mxu0 %v171_v3 }
  0x1b   : > { %p355_p2 = por %p354_p1, %p353_p0 }
  0x1c   : > { %195 = vmatpush.msra.mxu0 %v170_v4 }
  0x1d   : > { %p356_p3 = pnand %p355_p2, %p351_p13 }
  0x1e   : > { %196 = vmatpush.msra.mxu0 %v169_v5 }
  0x20   : > { %197 = vmatpush.msra.mxu0 %v168_v6 }
  0x22   : > { %198 = vmatpush.msra.mxu0 %v167_v7 }
  0x23   : > { %287 = vmatmul.msk.f32.vlgmr.msra.gmra.mxu0 %vm179_vm0, %v166_v8 }
  0xa0   : > { %v200_v10 = vpop.f32.mrf.mxu0 }
  0xa1   : > { %v201_v11 = vadd.f32 %v331_v9, %v200_v10 }
  0xa3   : > { %v203_v12 = vmax.f32 %v201_v11, 0.0 }
  0xa5   : > { %205 = vst.msk [vmem:[%s161_s8] sm:$0xff] %vm204_vm1, %v203_v12 }
  0xa6   : > { %359 = shalt.err (!%p356_p3)
}
  0xa7   : > { %292 = dma.vmem_to_hbm [thread:$0]  (%p454_p5), %s220_s9, 128, %s222_s10, %s207_s16  }
  0xa8 PF: > { %p298_p4 = scmp.ge.s32.totalorder %s394_s15, 2  ;;  %s233_s27 = sand.u32 1, %s382_s12  }
  0xa9   : > { %s234_s28 = scalar_lea.sflag [#allocation3], %s233_s27 }
  0xaa   : > { %p295_p7 = pnand %p298_p4, %p458_p6 }
  0xac   : > { %p296_p8 = pneg %p295_p7 }
  0xae   : > { %377 = dma.done.wait (%p296_p8), %s234_s28, 128  }
  0xaf   : > { %379 = vsyncadd (%p296_p8), %s234_s28, 4294967168  ;;  %p13_p9 = scmp.ge.s32.totalorder %s441_s18, 4   ;;  %s534_s12 = smov %s386_s13 }
  0xb0   : > { %s535_s13 = smov %s390_s14  ;;  %s536_s14 = smov %s452_s21 }
  0xb1   : > { %s537_s15 = smov %s441_s18  ;;  %15 = sbr.rel (!%p13_p9) target bundleno = 3 (0x3), region = 67 }
  0xb6   :  { %240 = vsyncpa [#allocation3], 1 }
  0xb7   :  { %242 = vsyncpa [#allocation3 + $0x1], 1 }

</bundles_post_ra>
